<compile_context>
chip_gen: v6e
topology: v6e:2x2x1
jax: 0.10.0
libtpu: 0.0.40
codegen_flags: <defaults>
</compile_context>

<pallas_src>
import functools

import jax
import jax.numpy as jnp
from jax.experimental import pallas as pl
from jax.experimental.pallas import tpu as pltpu


def _round_up(x, m):
    return (x + m - 1) // m * m


def _largest_divisor_leq(n, cap):
    cap = max(1, min(int(cap), n))
    for d in range(cap, 0, -1):
        if n % d == 0:
            return d
    return 1


# ---------------------------------------------------------------------------
# Fused single-pass kernel: one block = (bt, C, HW); x read once, written once.
# ---------------------------------------------------------------------------
def _ca_fused_kernel(x_ref, w1_ref, w2_ref, o_ref, *, hw):
    xf = x_ref[...].astype(jnp.float32)                       # (bt, C, HW)
    # global avg + max pooling over spatial; fc1(avg)+fc1(max) == fc1(avg+max)
    pooled = jnp.sum(xf, axis=2) * (1.0 / hw) + jnp.max(xf, axis=2)   # (bt, C)
    h = jnp.einsum("bc,rc->br", pooled, w1_ref[...].astype(jnp.float32),
                   preferred_element_type=jnp.float32)        # (bt, Cr)
    h = jnp.maximum(h, 0.0)                                   # ReLU
    logits = jnp.einsum("br,cr->bc", h, w2_ref[...].astype(jnp.float32),
                        preferred_element_type=jnp.float32)   # (bt, C)
    scale = jax.nn.sigmoid(logits)
    o_ref[...] = (xf * scale[:, :, None]).astype(o_ref.dtype)


# ---------------------------------------------------------------------------
# Fallback pass 1: online sum/max over HW tiles (lane-dense accumulators),
# tiny squeeze-MLP at the last tile -> per-channel sigmoid scale.
# ---------------------------------------------------------------------------
def _ca_scale_kernel(x_ref, w1_ref, w2_ref, scale_ref, sum_sc, max_sc, *, hw, thw):
    j = pl.program_id(1)

    @pl.when(j == 0)
    def _init():
        sum_sc[...] = jnp.zeros_like(sum_sc)
        max_sc[...] = jnp.full_like(max_sc, -jnp.inf)

    c_dim = x_ref.shape[0]
    nchunks = thw // 128
    need_mask = (hw % thw) != 0           # only possible on the partial tail tile
    base = j * thw
    if need_mask:
        lane = jax.lax.broadcasted_iota(jnp.int32, (c_dim, 128), 1)

    # per-128-lane partials: plain VPU adds/maxes, no cross-lane reduce per tile
    part_s = jnp.zeros((c_dim, 128), jnp.float32)
    part_m = jnp.full((c_dim, 128), -jnp.inf, jnp.float32)
    for k in range(nchunks):
        chunk = x_ref[:, k * 128:(k + 1) * 128].astype(jnp.float32)   # (C, 128)
        if need_mask:
            valid = (base + k * 128 + lane) < hw
            cs = jnp.where(valid, chunk, 0.0)
            cm = jnp.where(valid, chunk, -jnp.inf)
        else:
            cs = cm = chunk
        part_s = part_s + cs
        part_m = jnp.maximum(part_m, cm)

    sum_sc[...] += part_s
    max_sc[...] = jnp.maximum(max_sc[...], part_m)

    @pl.when(j == pl.num_programs(1) - 1)
    def _finalize():
        # single cross-lane (XLU) reduce per batch row, then the tiny MLP
        pooled = (jnp.sum(sum_sc[...], axis=1, keepdims=True) * (1.0 / hw)
                  + jnp.max(max_sc[...], axis=1, keepdims=True))          # (C, 1)
        h = jnp.maximum(
            jnp.dot(w1_ref[...].astype(jnp.float32), pooled,
                    preferred_element_type=jnp.float32), 0.0)             # (Cr, 1)
        logits = jnp.dot(w2_ref[...].astype(jnp.float32), h,
                         preferred_element_type=jnp.float32)              # (C, 1)
        scale_ref[...] = jax.nn.sigmoid(logits)


# ---------------------------------------------------------------------------
# Fallback pass 2: stream HW tiles and apply the per-channel scale.
# ---------------------------------------------------------------------------
def _ca_apply_kernel(x_ref, scale_ref, o_ref):
    o_ref[...] = (x_ref[...].astype(jnp.float32) * scale_ref[...]).astype(o_ref.dtype)


# ---------------------------------------------------------------------------
# Wrapper: VMEM-aware path selection, no wrapper-side pad/slice copies.
# ---------------------------------------------------------------------------
def channel_attention(x_nchw, w1, w2, *, vmem_budget_bytes=None):
    """x_nchw: (B, C, H, W); w1: (Cr, C); w2: (C, Cr). Returns (B, C, H, W)."""
    B, C, H, W = (int(d) for d in x_nchw.shape)
    Cr = int(w1.shape[0])
    HW = H * W
    dtype = x_nchw.dtype
    itemsize = jnp.dtype(dtype).itemsize

    try:
        cap = int(pltpu.get_tpu_info().vmem_capacity_bytes)
    except Exception:
        cap = 64 * 2**20                              # conservative (v7x per-TC VMEM)
    budget = int(0.85 * cap) if vmem_budget_bytes is None else int(vmem_budget_bytes)
    budget = min(budget, int(0.9 * cap))

    x_r = x_nchw.reshape(B, C, HW)

    sub = 8 if itemsize >= 4 else 32 // itemsize      # sublane packing (8 f32, 16 bf16)
    C_pad = _round_up(C, sub)
    HW_pad = _round_up(HW, 128)
    per_b_vmem = C_pad * HW_pad * itemsize            # VMEM footprint of one batch row
    w_bytes = int(w1.size) * w1.dtype.itemsize + int(w2.size) * w2.dtype.itemsize

    # --- single-pass capacity: in + out, double-buffered => 4 buffers of the block ---
    fused_budget = budget - 2 * w_bytes - (1 << 20)
    bt_vmem = fused_budget // (4 * per_b_vmem)

    # --- fallback tile size (sized from the SAME budget used for vmem_limit_bytes) ---
    fb_budget = budget - 2 * w_bytes - (2 << 20)
    thw_cap = (fb_budget // (4 * C_pad * itemsize)) // 128 * 128
    thw = max(128, min(HW_pad, 4096, thw_cap))

    use_fused = (bt_vmem >= 1) or (thw >= HW)         # two-pass gains nothing if 1 tile

    if use_fused:
        if bt_vmem >= 1:
            bt_pipe = max(1, (8 << 20) // per_b_vmem)         # ~<= 8 MiB blocks
            nb_min = min(B, 4) if B >= 2 else 1               # keep >= 4 (>=2) grid steps
            bt_grid = max(1, B // nb_min)
            bt = _largest_divisor_leq(B, min(bt_vmem, bt_pipe, bt_grid))
        else:
            bt = 1
        nb = B // bt

        needed = 4 * bt * per_b_vmem + 2 * w_bytes + (2 << 20)
        vmem_limit = int(min(cap, max(needed, 32 * 2**20)))

        cost = pl.CostEstimate(
            flops=int(3 * B * C * HW + 4 * B * C * Cr),
            transcendentals=int(B * C),
            bytes_accessed=int(2 * B * C * HW * itemsize + w_bytes))

        out = pl.pallas_call(
            functools.partial(_ca_fused_kernel, hw=HW),
            out_shape=jax.ShapeDtypeStruct((B, C, HW), dtype),
            grid_spec=pltpu.PrefetchScalarGridSpec(
                num_scalar_prefetch=0,
                grid=(nb,),
                in_specs=[
                    pl.BlockSpec((bt, C, HW), lambda b: (b, 0, 0)),
                    # constant block index -> weights stay resident, no re-DMA per step
                    pl.BlockSpec((Cr, C), lambda b: (0, 0)),
                    pl.BlockSpec((C, Cr), lambda b: (0, 0)),
                ],
                out_specs=pl.BlockSpec((bt, C, HW), lambda b: (b, 0, 0)),
            ),
            compiler_params=pltpu.CompilerParams(
                dimension_semantics=("parallel",),
                vmem_limit_bytes=vmem_limit),
            cost_estimate=cost,
            input_output_aliases={0: 0},
        )(x_r, w1, w2)
        return out.reshape(B, C, H, W)

    # ------------------- two-pass HW-tiled fallback -------------------
    nhw = -(-HW // thw)
    scratch_bytes = 2 * C_pad * 128 * 4
    p1_needed = 3 * C_pad * thw * itemsize + 2 * w_bytes + scratch_bytes + (2 << 20)
    p2_needed = 4 * C_pad * thw * itemsize + (2 << 20)
    p1_limit = int(min(cap, max(p1_needed, 32 * 2**20)))
    p2_limit = int(min(cap, max(p2_needed, 32 * 2**20)))

    x_idx = lambda b, j: (b, 0, j)
    try:
        x_spec_p1 = pl.BlockSpec((None, C, thw), x_idx, pipeline_mode=pl.Buffered(3))
    except (TypeError, AttributeError):
        x_spec_p1 = pl.BlockSpec((None, C, thw), x_idx)

    scale = pl.pallas_call(
        functools.partial(_ca_scale_kernel, hw=HW, thw=thw),
        out_shape=jax.ShapeDtypeStruct((B, C, 1), jnp.float32),
        grid_spec=pltpu.PrefetchScalarGridSpec(
            num_scalar_prefetch=0,
            grid=(B, nhw),
            in_specs=[
                x_spec_p1,
                pl.BlockSpec((Cr, C), lambda b, j: (0, 0)),
                pl.BlockSpec((C, Cr), lambda b, j: (0, 0)),
            ],
            out_specs=pl.BlockSpec((None, C, 1), lambda b, j: (b, 0, 0)),
            scratch_shapes=[pltpu.VMEM((C, 128), jnp.float32),
                            pltpu.VMEM((C, 128), jnp.float32)],
        ),
        compiler_params=pltpu.CompilerParams(
            dimension_semantics=("parallel", "arbitrary"),
            vmem_limit_bytes=p1_limit),
    )(x_r, w1, w2)

    out = pl.pallas_call(
        _ca_apply_kernel,
        out_shape=jax.ShapeDtypeStruct((B, C, HW), dtype),
        grid_spec=pltpu.PrefetchScalarGridSpec(
            num_scalar_prefetch=0,
            grid=(B, nhw),
            in_specs=[
                pl.BlockSpec((None, C, thw), lambda b, j: (b, 0, j)),
                pl.BlockSpec((None, C, 1), lambda b, j: (b, 0, 0)),
            ],
            out_specs=pl.BlockSpec((None, C, thw), lambda b, j: (b, 0, j)),
        ),
        compiler_params=pltpu.CompilerParams(
            dimension_semantics=("parallel", "parallel"),
            vmem_limit_bytes=p2_limit),
        input_output_aliases={0: 0},
    )(x_r, scale)
    return out.reshape(B, C, H, W)


# ---------------------------------------------------------------------------
# Pure-JAX reference mirroring the PyTorch forward (literal op order).
# ---------------------------------------------------------------------------
def channel_attention_ref(x, w1, w2):
    avg = jnp.mean(x, axis=(2, 3), keepdims=True)             # (B, C, 1, 1)
    mx = jnp.max(x, axis=(2, 3), keepdims=True)               # (B, C, 1, 1)
    fc1 = lambda t: jnp.einsum("bcij,rc->brij", t, w1)
    fc2 = lambda t: jnp.einsum("brij,cr->bcij", t, w2)
    out = jnp.maximum(fc1(avg) + fc1(mx), 0.0)
    out = fc2(out)
    return jax.nn.sigmoid(out) * x


if __name__ == "__main__":
    def make_inputs(key, B, C, H, W, reduction=16, dtype=jnp.float32):
        Cr = max(1, C // reduction)
        kx, k1, k2 = jax.random.split(key, 3)
        x = jax.random.normal(kx, (B, C, H, W), dtype=jnp.float32).astype(dtype)
        w1 = jax.random.normal(k1, (Cr, C), dtype=jnp.float32) * (2.0 / C) ** 0.5
        w2 = jax.random.normal(k2, (C, Cr), dtype=jnp.float32) * (2.0 / Cr) ** 0.5
        return x, w1, w2

    ka, kb, kc, ke = jax.random.split(jax.random.PRNGKey(0), 4)

    # 1) main shape: fused single-pass path, grid length 2 (pipelined / megacore-shardable)
    x_a, w1_a, w2_a = make_inputs(ka, 2, 64, 16, 16)
    ref_a = channel_attention_ref(x_a, w1_a, w2_a)
    y_a = jax.block_until_ready(channel_attention(x_a, w1_a, w2_a))
    assert y_a.shape == x_a.shape
    assert jnp.allclose(y_a, ref_a, atol=1e-5, rtol=1e-5), "fused path mismatch"

    # 2) HW not a multiple of 128: no wrapper pad/slice, masked tail stores in-kernel
    x_b, w1_b, w2_b = make_inputs(kb, 2, 32, 10, 10)
    ref_b = channel_attention_ref(x_b, w1_b, w2_b)
    y_b = jax.block_until_ready(channel_attention(x_b, w1_b, w2_b))
    assert jnp.allclose(y_b, ref_b, atol=1e-5, rtol=1e-5), "non-128 HW mismatch"

    # 3) larger batch: bt > 1 with nb >= 4 grid steps
    x_c, w1_c, w2_c = make_inputs(kc, 8, 32, 8, 8)
    ref_c = channel_attention_ref(x_c, w1_c, w2_c)
    y_c = jax.block_until_ready(channel_attention(x_c, w1_c, w2_c))
    assert jnp.allclose(y_c, ref_c, atol=1e-5, rtol=1e-5), "batch-tiled mismatch"

    # 4) force the two-pass HW-tiled fallback via a tiny VMEM budget
    y_d = jax.block_until_ready(
        channel_attention(x_a, w1_a, w2_a, vmem_budget_bytes=512 * 1024))
    assert jnp.allclose(y_d, ref_a, atol=1e-5, rtol=1e-5), "two-pass mismatch"

    # 5) fallback with a partial tail tile (HW % thw != 0) and B == 1
    x_e, w1_e, w2_e = make_inputs(ke, 1, 32, 20, 20)
    ref_e = channel_attention_ref(x_e, w1_e, w2_e)
    y_e = jax.block_until_ready(
        channel_attention(x_e, w1_e, w2_e, vmem_budget_bytes=256 * 1024))
    assert jnp.allclose(y_e, ref_e, atol=1e-5, rtol=1e-5), "two-pass tail mismatch"

    # 6) bf16 activations: bf16 I/O, f32 accumulation inside the kernel
    x_f = x_a.astype(jnp.bfloat16)
    ref_f = channel_attention_ref(x_f.astype(jnp.float32), w1_a, w2_a)
    y_f = jax.block_until_ready(channel_attention(x_f, w1_a, w2_a))
    assert y_f.dtype == jnp.bfloat16
    assert jnp.allclose(y_f.astype(jnp.float32), ref_f, atol=5e-2, rtol=5e-2), \
        "bf16 mismatch"

    print("KERNEL_OK")
</pallas_src>

<mosaic_0001>
module attributes {stable_mosaic.version = 11 : i64} {
  func.func @_ca_fused_kernel(%arg0: i32, %arg1: memref<1x64x256xf32, #tpu.memory_space<vmem>>, %arg2: memref<4x64xf32, #tpu.memory_space<vmem>>, %arg3: memref<64x4xf32, #tpu.memory_space<vmem>>, %arg4: memref<1x64x256xf32, #tpu.memory_space<vmem>>) attributes {dimension_semantics = [#tpu.dimension_semantics<parallel>], iteration_bounds = array<i64: 2>, scalar_prefetch = 0 : i64, scratch_operands = 0 : i64, tpu.core_type = #tpu.core_type<tc>, window_params = [{transform_indices = @transform_0, window_bounds = array<i64: 1, 64, 256>}, {pipeline_mode = #tpu.pipeline_mode<synchronous>, transform_indices = @transform_1, window_bounds = array<i64: 4, 64>}, {pipeline_mode = #tpu.pipeline_mode<synchronous>, transform_indices = @transform_2, window_bounds = array<i64: 64, 4>}, {transform_indices = @transform_3, window_bounds = array<i64: 1, 64, 256>}]} {
    %c0 = arith.constant 0 : index
    %c0_0 = arith.constant 0 : index
    %c0_1 = arith.constant 0 : index
    %0 = vector.load %arg1[%c0, %c0_0, %c0_1] : memref<1x64x256xf32, #tpu.memory_space<vmem>>, vector<1x64x256xf32>
    %cst = arith.constant dense<0.000000e+00> : vector<1x64xf32>
    %1 = vector.multi_reduction <add>, %0, %cst [2] : vector<1x64x256xf32> to vector<1x64xf32>
    %cst_2 = arith.constant 3.906250e-03 : f32
    %2 = vector.broadcast %cst_2 : f32 to vector<1x64xf32>
    %3 = arith.mulf %1, %2 : vector<1x64xf32>
    %cst_3 = arith.constant dense<0xFF800000> : vector<1x64xf32>
    %4 = vector.multi_reduction <maximumf>, %0, %cst_3 [2] : vector<1x64x256xf32> to vector<1x64xf32>
    %5 = arith.addf %3, %4 : vector<1x64xf32>
    %c0_4 = arith.constant 0 : index
    %c0_5 = arith.constant 0 : index
    %6 = vector.load %arg2[%c0_4, %c0_5] : memref<4x64xf32, #tpu.memory_space<vmem>>, vector<4x64xf32>
    "tpu.trace_start"() <{level = 10 : i32, message = "bc,rc->br"}> : () -> ()
    %cst_6 = arith.constant dense<0.000000e+00> : vector<1x4xf32>
    %7 = tpu.matmul %5, %6, %cst_6 {dimension_numbers = #tpu.dot_dimension_numbers<[1], [1], [0], [0], [0, 0, 1, 0], [], []>} : vector<1x64xf32>, vector<4x64xf32>, vector<1x4xf32> -> vector<1x4xf32>
    "tpu.trace_stop"() : () -> ()
    %cst_7 = arith.constant 0.000000e+00 : f32
    %8 = vector.broadcast %cst_7 : f32 to vector<1x4xf32>
    %9 = arith.maximumf %7, %8 : vector<1x4xf32>
    %c0_8 = arith.constant 0 : index
    %c0_9 = arith.constant 0 : index
    %10 = vector.load %arg3[%c0_8, %c0_9] : memref<64x4xf32, #tpu.memory_space<vmem>>, vector<64x4xf32>
    "tpu.trace_start"() <{level = 10 : i32, message = "br,cr->bc"}> : () -> ()
    %cst_10 = arith.constant dense<0.000000e+00> : vector<1x64xf32>
    %11 = tpu.matmul %9, %10, %cst_10 {dimension_numbers = #tpu.dot_dimension_numbers<[1], [1], [0], [0], [0, 0, 1, 0], [], []>} : vector<1x4xf32>, vector<64x4xf32>, vector<1x64xf32> -> vector<1x64xf32>
    "tpu.trace_stop"() : () -> ()
    %12 = arith.negf %11 : vector<1x64xf32>
    %13 = math.exp %12 : vector<1x64xf32>
    %cst_11 = arith.constant 1.000000e+00 : f32
    %14 = vector.broadcast %cst_11 : f32 to vector<1x64xf32>
    %15 = arith.addf %14, %13 : vector<1x64xf32>
    %16 = arith.divf %14, %15 : vector<1x64xf32>
    %17 = vector.shape_cast %16 : vector<1x64xf32> to vector<1x64x1xf32>
    %18 = vector.broadcast %17 : vector<1x64x1xf32> to vector<1x64x256xf32>
    %19 = arith.mulf %0, %18 : vector<1x64x256xf32>
    %c0_12 = arith.constant 0 : index
    %c0_13 = arith.constant 0 : index
    %c0_14 = arith.constant 0 : index
    %20 = vector.load %arg4[%c0_12, %c0_13, %c0_14] : memref<1x64x256xf32, #tpu.memory_space<vmem>>, vector<1x64x256xf32>
    tpu.vector_store %arg4[%c0_12, %c0_13, %c0_14], %19 {strides = array<i32>} : memref<1x64x256xf32, #tpu.memory_space<vmem>>, vector<1x64x256xf32>,
    return
  }
  func.func @transform_0(%arg0: i32) -> (i32, i32, i32) {
    %c0_i32 = arith.constant 0 : i32
    %c0_i32_0 = arith.constant 0 : i32
    %c0_i32_1 = arith.constant 0 : i32
    return %arg0, %c0_i32, %c0_i32_0 : i32, i32, i32
  }
  func.func @transform_1(%arg0: i32) -> (i32, i32) {
    %c0_i32 = arith.constant 0 : i32
    %c0_i32_0 = arith.constant 0 : i32
    %c0_i32_1 = arith.constant 0 : i32
    return %c0_i32, %c0_i32_0 : i32, i32
  }
  func.func @transform_2(%arg0: i32) -> (i32, i32) {
    %c0_i32 = arith.constant 0 : i32
    %c0_i32_0 = arith.constant 0 : i32
    %c0_i32_1 = arith.constant 0 : i32
    return %c0_i32, %c0_i32_0 : i32, i32
  }
  func.func @transform_3(%arg0: i32) -> (i32, i32, i32) {
    %c0_i32 = arith.constant 0 : i32
    %c0_i32_0 = arith.constant 0 : i32
    %c0_i32_1 = arith.constant 0 : i32
    return %arg0, %c0_i32, %c0_i32_0 : i32, i32, i32
  }
}

</mosaic_0001>

<bundles_post_ra>
// kernel: tpu_custom_call.1
= control target key start
LH: loop header
LB: loop body
LE: loop exit
PB: predicated region body
PF: predicated region fallthrough
CT: control target
= control target key end

     0   :  { %8 = vsyncpa [#allocation3], 0  ;;  %s1241_s0 = inlined_call_operand.hbm [shape: f32[2,64,256], index: 0, kind: input, shape index: {}, may-alias: {0,3}]   ;;  %s1242_s1 = inlined_call_operand.vmem [shape: f32[4,64], index: 1, kind: input, shape index: {}]   ;;  %s1243_s2 = inlined_call_operand.vmem [shape: f32[64,4], index: 2, kind: input, shape index: {}]   ;;  %s1244_s3 = inlined_call_operand.hbm [shape: f32[2,64,256], index: 3, kind: output, shape index: {}, may-alias: {0,3}]  }
   0x1   :  { %10 = vsyncpa [#allocation3 + $0x1], 0 }
   0x2   :  { %11 = vsyncpa [#allocation4], 0 }
   0x3   :  { %13 = vsyncpa [#allocation4 + $0x1], 0  ;;  %s917_s12 = smov 0   ;;  %s919_s13 = smov 0  }
   0x4   :  { %s921_s14 = smov 0   ;;  %s923_s15 = smov 0  }
   0x5 LB: > { %s938_s16 = sadd.s32 4294967295, %s887_s15   ;;  %s676_s17 = sadd.s32 4294967294, %s887_s15   ;;  %s887_s15 = sphi %s923_s15, %s1259_s15   ;;  %s883_s14 = sphi %s921_s14, %s1258_s14   ;;  %s879_s13 = sphi %s919_s13, %s1257_s13   ;;  %s875_s12 = sphi %s917_s12, %s1256_s12  }
   0x6   : > { %s942_s18 = sadd.s32 1, %s887_s15   ;;  %s26_s19 = sadd.s32 1, %s883_s14 }
   0x7   : > { %s23_s20 = ssub.s32 %s887_s15, %s942_s18  ;;  %p33_p0 = scmp.ne.s32.totalorder %s883_s14, %s879_s13 }
   0x8   : > { %p24_p1 = scmp.eq.s32.totalorder %s23_s20, 0  ;;  %p34_p2 = scmp.eq.s32.totalorder %s887_s15, 0 }
   0x9   : > { %p39_p3 = scmp.ne.s32.totalorder %s879_s13, %s875_s12  ;;  %p40_p4 = scmp.eq.s32.totalorder %s938_s16, 0 }
   0xa   : > { %s954_s21 = scalar_select %p24_p1, %s883_s14, %s26_s19  }
   0xb   : > { %p956_p5 = por %p34_p2, %p33_p0  ;;  %p960_p6 = por %p40_p4, %p39_p3 }
   0xc   : > { %p105_p7 = scmp.eq.s32.totalorder %s938_s16, 1  ;;  %p111_p8 = scmp.eq.s32.totalorder %s676_s17, 1 }
   0xd   : > { %s1248_s23 = scalar_select %p960_p6, 1, 0 }
   0xe   : > { %p751_p10 = scmp.lt.s32.totalorder %s887_s15, 2  ;;  %p967_p11 = por %p105_p7, %p33_p0 }
   0xf   : > { %p971_p12 = por %p111_p8, %p39_p3  ;;  %s137_s26 = sand.u32 1, %s883_s14  }
  0x10   : > { %s1249_s24 = scalar_select %p967_p11, 1, 0 }
  0x11   : > { %s1250_s25 = scalar_select %p971_p12, 1, 0 }
  0x12   : > { %s702_s27 = sshll.u32 %s887_s15, 11  ;;  %s679_s28 = sshll.u32 %s137_s26, 7 }
  0x13   : > { %s980_s4 = scalar_lea.hbm %s1241_s0, %s702_s27  ;;  %s141_s5 = scalar_lea.vmem [#allocation2], %s679_s28 }
  0x14   : > { %s148_s6 = sshll.u32 %s141_s5, 4  ;;  %p984_p13 = pnand %p751_p10, %p956_p5  ;;  %s988_s6 = int_to_ptr.vmem [resolvable:$true] %s148_s6 }
  0x15   : > { %s990_s8 = scalar_lea.sflag [#allocation3], %s137_s26  ;;  %s795_s9 = scalar_lea.hbm %s980_s4, 2048 }
  0x16   : > { %p796_p0 = scmp.ne.s32.totalorder %s980_s4, %s795_s9  ;;  %p797_p1 = pneg %p984_p13 }
  0x17   : > { %s800_s17 = scalar_lea.hbm %s1241_s0, 4096  ;;  %p801_p4 = scmp.lt.s32.totalorder %s980_s4, %s1241_s0 }
  0x18   : > { %p798_p2 = pnand %p797_p1, %p796_p0  ;;  %p802_p5 = scmp.lt.s32.totalorder %s800_s17, %s795_s9 }
  0x1a   : > { %p799_p3 = pneg %p798_p2  ;;  %p803_p7 = por %p802_p5, %p801_p4 }
  0x1c   : > { %p804_p8 = pnand %p803_p7, %p799_p3 }
  0x1e   : > { %807 = shalt.err (!%p804_p8)
}
  0x1f   : > { %s808_s22 = scalar_lea.vmem %s988_s6, 2048  ;;  %s889_s26 = smov [#allocation2]  }
  0x20   : > { %p809_p10 = scmp.ne.s32.totalorder %s988_s6, %s808_s22  ;;  %s813_s27 = sshll.u32 %s889_s26, 4  ;;  %s814_s27 = int_to_ptr.vmem [resolvable:$false] %s813_s27 }
  0x21   : > { %s815_s28 = scalar_lea.vmem %s814_s27, 4096  ;;  %p816_p2 = scmp.lt.s32.totalorder %s988_s6, %s814_s27 }
  0x22   : > { %p811_p9 = pnand %p809_p10, %p797_p1  ;;  %p817_p12 = scmp.lt.s32.totalorder %s815_s28, %s808_s22 }
  0x24   : > { %p812_p0 = pneg %p811_p9  ;;  %p818_p11 = por %p817_p12, %p816_p2 }
  0x26   : > { %p819_p6 = pnand %p818_p11, %p812_p0 }
  0x28   : > { %822 = shalt.err (!%p819_p6)
}
  0x29   : > { %s890_s29 = smov 256   ;;  %s891_s30 = smov 16  }
  0x2a   : > { %746 = dma.hbm_to_vmem [thread:$0]  (!%p984_p13), %s980_s4, 2048, %s988_s6, %s990_s8, %s890_s29, %s890_s29, %s891_s30  }
  0x2b   : > { %p682_p9 = scmp.ge.s32.totalorder %s887_s15, 1  ;;  %p156_p1 = scmp.lt.s32.totalorder %s887_s15, 3 }
  0x2d   : > { %p157_p3 = pnand %p682_p9, %p156_p1 }
  0x2e   : > { %s1014_s5 = sand.u32 (!%p157_p3), 1, %s879_s13   ;;  %p1252_p6 = scmp.ne.s32.totalorder (!%p157_p3), %s1248_s23, 0 }
  0x2f   : > { %160 = sbr.rel (%p157_p3) target bundleno = 798 (0x31e), region = 32  ;;  %s683_s9 = sshll.u32 (!%p157_p3), %s1014_s5, 7 }
  0x30   : > { %s163_s10 = scalar_lea.sflag (!%p157_p3), [#allocation3], %s1014_s5  ;;  %s1020_s11 = scalar_lea.vmem (!%p157_p3), [#allocation2], %s683_s9 }
  0x34   : > { %866 = dma.done.wait (%p1252_p6), %s163_s10, 2048  }
  0x35   : > { %868 = vsyncadd (%p1252_p6), %s163_s10, 4294965248  ;;  %v1027_v0 = vld [vmem:[%s1020_s11 + $0x20] sm:$0xff]  ;;  %v1030_v1 = vld [vmem:[%s1020_s11 + $0x28] sm:$0xff]  ;;  %v892_v32 = vmov 0.0   ;;  %vm333_vm0 = vcmask 523264   ;;  %vm893_vm1 = vmmov 0   ;;  %v278_v45 = vlaneseq }
  0x36   : > { %v1033_v2 = vld [vmem:[%s1020_s11] sm:$0xff]  ;;  %v211_v3 = vadd.f32 %v1030_v1, %v1027_v0  ;;  %v1038_v4 = vld [vmem:[%s1020_s11 + $0x8] sm:$0xff]  ;;  %v1041_v5 = vld [vmem:[%s1020_s11 + $0x30] sm:$0xff]  ;;  %v243_v16 = vmax.f32 %v1027_v0, %v1030_v1  ;;  %715 = vmatprep.subr.mxu0 %v892_v32  ;;  %720 = vmatprep.subr.mxu1 %v892_v32  ;;  %vm418_vm2 = vcmask 31744   ;;  %vm289_vm3 = vcmask 130112   ;;  %s1161_s6 = scalar_lea.vmem [#allocation5], %s683_s9 }
  0x37   : > { %v1044_v6 = vld [vmem:[%s1020_s11 + $0x38] sm:$0xff]  ;;  %v205_v7 = vadd.f32 %v1038_v4, %v1033_v2  ;;  %v1049_v8 = vld [vmem:[%s1020_s11 + $0x10] sm:$0xff]  ;;  %v237_v13 = vmax.f32 %v1033_v2, %v1038_v4  ;;  %v1063_v14 = vld [vmem:[%s1020_s11 + $0x40] sm:$0xff]  ;;  %717 = vmatprep.mubr.msk.f32.mxu0 %vm893_vm1, %v892_v32  ;;  %736 = vmatprep.mubr.msk.f32.mxu1 %vm893_vm1, %v892_v32  ;;  %v279_v48 = vand.u32 127, %v278_v45  ;;  %v1138_v51 = vshrl.u32 %v278_v45, 7  ;;  %s703_s9 = sshll.u32 %s938_s16, 11 }
  0x38   : > { %v1052_v9 = vld [vmem:[%s1020_s11 + $0x18] sm:$0xff]  ;;  %212 = vadd.xlane.f32.xlu1 %v211_v3  ;;  %v214_v10 = vadd.f32 %v1044_v6, %v1041_v5  ;;  %v1066_v15 = vld [vmem:[%s1020_s11 + $0x48] sm:$0xff]  ;;  %v1073_v18 = vld [vmem:[%s1020_s11 + $0x50] sm:$0xff]  ;;  %v246_v20 = vmax.f32 %v1041_v5, %v1044_v6  ;;  %vm296_vm4 = vcmask 195712   ;;  %vm303_vm5 = vcmask 261312   ;;  %s603_s7 = sshll.u32 %s1161_s6, 4  ;;  %s1192_s19 = scalar_lea.hbm %s1244_s3, %s703_s9  ;;  %s1194_s7 = int_to_ptr.vmem [resolvable:$true] %s603_s7 }
  0x39   : > { %206 = vadd.xlane.f32.xlu0 %v205_v7  ;;  %v208_v11 = vadd.f32 %v1052_v9, %v1049_v8  ;;  %v240_v12 = vmax.f32 %v1049_v8, %v1052_v9  ;;  %v217_v17 = vadd.f32 %v1066_v15, %v1063_v14  ;;  %v1076_v19 = vld [vmem:[%s1020_s11 + $0x58] sm:$0xff]  ;;  %v1083_v22 = vld [vmem:[%s1020_s11 + $0x60] sm:$0xff]  ;;  %v1086_v23 = vld [vmem:[%s1020_s11 + $0x68] sm:$0xff]  ;;  %v249_v24 = vmax.f32 %v1063_v14, %v1066_v15  ;;  %s590_s16 = scalar_lea.sflag [#allocation4], %s1014_s5  ;;  %s823_s20 = scalar_lea.vmem %s1194_s7, 2048 }
  0x3a   : > { %v220_v21 = vadd.f32 %v1076_v19, %v1073_v18  ;;  %v223_v25 = vadd.f32 %v1086_v23, %v1083_v22  ;;  %v1093_v26 = vld [vmem:[%s1020_s11 + $0x70] sm:$0xff]  ;;  %v1096_v27 = vld [vmem:[%s1020_s11 + $0x78] sm:$0xff]  ;;  %v252_v28 = vmax.f32 %v1073_v18, %v1076_v19  ;;  %v255_v31 = vmax.f32 %v1083_v22, %v1086_v23  ;;  %v269_v33 = vld [vmem:[%s1242_s1] sm:$0xf]  ;;  %p824_p11 = scmp.ne.s32.totalorder %s1194_s7, %s823_s20  ;;  %p1253_p12 = scmp.ne.s32.totalorder %s1249_s24, 0 }
  0x3b   : > { %v226_v29 = vadd.f32 %v1096_v27, %v1093_v26  ;;  %v258_v30 = vmax.f32 %v1093_v26, %v1096_v27  ;;  %716 = vmatpush3.xpose.msk.msra.mxu0 %vm333_vm0, %v269_v33  ;;  %v417_v34 = vld [vmem:[%s1243_s2 + $0x38] sm:$0xff]  ;;  %v416_v35 = vld [vmem:[%s1243_s2 + $0x30] sm:$0xff]  ;;  %v415_v36 = vld [vmem:[%s1243_s2 + $0x28] sm:$0xff]  ;;  %v284_v52 = vadd.s32 4294967288, %v279_v48  ;;  %v291_v55 = vadd.s32 4294967280, %v279_v48  ;;  %s894_s22 = smov [#allocation5]  }
  0x3c   : > { %215 = vadd.xlane.f32.xlu1 %v214_v10  ;;  %721 = vmatpush3.xpose.msk.msra.mxu1 %vm418_vm2, %v417_v34  ;;  %v414_v37 = vld [vmem:[%s1243_s2 + $0x20] sm:$0xff]  ;;  %v413_v38 = vld [vmem:[%s1243_s2 + $0x18] sm:$0xff]  ;;  %v412_v39 = vld [vmem:[%s1243_s2 + $0x10] sm:$0xff]  ;;  %v298_v58 = vadd.s32 4294967272, %v279_v48  ;;  %v282_v61 = vsub.s32 %v279_v48, %v1138_v51  ;;  %v305_v62 = vadd.s32 4294967264, %v279_v48  ;;  %vm310_vm6 = vcmask 326912   ;;  %p825_p13 = pnand %p824_p11, %p1253_p12 }
  0x3d   : > { %209 = vadd.xlane.f32.xlu0 %v208_v11  ;;  %722 = vmatprep.subr.mxu1 %v892_v32  ;;  %v411_v40 = vld [vmem:[%s1243_s2 + $0x8] sm:$0xff]  ;;  %v287_v60 = vsub.s32 %v284_v52, %v1138_v51  ;;  %vm317_vm7 = vcmask 392512   ;;  %vm324_vm8 = vcmask 458112   ;;  %vm331_vm9 = vcmask 523712   ;;  %s827_s26 = sshll.u32 %s894_s22, 4  ;;  %s828_s26 = int_to_ptr.vmem [resolvable:$false] %s827_s26 }
  0x3e   : > { %p826_p4 = pneg %p825_p13  ;;  %s829_s27 = scalar_lea.vmem %s828_s26, 4096 }
  0x3f   : > { %p830_p5 = scmp.lt.s32.totalorder %s1194_s7, %s828_s26  ;;  %p831_p7 = scmp.lt.s32.totalorder %s829_s27, %s823_s20 }
  0x40   : > { %241 = vmax.xlane.f32.xlu1 %v240_v12  ;;  %723 = vmatpush3.xpose.msk.msra.mxu1 %vm418_vm2, %v416_v35  ;;  %v312_v12 = vadd.s32 4294967256, %v279_v48 }
  0x41   : > { %238 = vmax.xlane.f32.xlu0 %v237_v13  ;;  %724 = vmatprep.subr.mxu1 %v892_v32  ;;  %v294_v13 = vsub.s32 %v291_v55, %v1138_v51  ;;  %p832_p8 = por %p831_p7, %p830_p5 }
  0x42   : > { %v315_v34 = vsub.s32 %v312_v12, %v1138_v51  ;;  %v524_v12 = vsub.s32 0, %v1138_v51 }
  0x43   : > { %p833_p10 = pnand %p832_p8, %p826_p4 }
  0x44   : > { %244 = vmax.xlane.f32.xlu1 %v243_v16  ;;  %725 = vmatpush3.xpose.msk.msra.mxu1 %vm418_vm2, %v415_v36 }
  0x45   : > { %218 = vadd.xlane.f32.xlu0 %v217_v17  ;;  %726 = vmatprep.subr.mxu1 %v892_v32 }
  0x48   : > { %247 = vmax.xlane.f32.xlu1 %v246_v20  ;;  %727 = vmatpush3.xpose.msk.msra.mxu1 %vm418_vm2, %v414_v37  ;;  %v301_v20 = vsub.s32 %v298_v58, %v1138_v51 }
  0x49   : > { %221 = vadd.xlane.f32.xlu0 %v220_v21  ;;  %728 = vmatprep.subr.mxu1 %v892_v32 }
  0x4c   : > { %250 = vmax.xlane.f32.xlu1 %v249_v24  ;;  %729 = vmatpush3.xpose.msk.msra.mxu1 %vm418_vm2, %v413_v38 }
  0x4d   : > { %224 = vadd.xlane.f32.xlu0 %v223_v25  ;;  %730 = vmatprep.subr.mxu1 %v892_v32  ;;  %v326_v25 = vadd.s32 4294967240, %v279_v48 }
  0x50   : > { %253 = vmax.xlane.f32.xlu1 %v252_v28  ;;  %731 = vmatpush3.xpose.msk.msra.mxu1 %vm418_vm2, %v412_v39  ;;  %v308_v28 = vsub.s32 %v305_v62, %v1138_v51 }
  0x51   : > { %227 = vadd.xlane.f32.xlu0 %v226_v29  ;;  %732 = vmatprep.subr.mxu1 %v892_v32 }
  0x54   : > { %259 = vmax.xlane.f32.xlu1 %v258_v30  ;;  %733 = vmatpush3.xpose.msk.msra.mxu1 %vm418_vm2, %v411_v40  ;;  %v329_v40 = vsub.s32 %v326_v25, %v1138_v51 }
  0x55   : > { %256 = vmax.xlane.f32.xlu0 %v255_v31  ;;  %734 = vmatprep.subr.mxu1 %v892_v32  ;;  %v319_v31 = vadd.s32 4294967248, %v279_v48 }
  0xc1   : > { %v213_v41 = vpop.xlane.xlu1 %212 }
  0xc2   : > { %v207_v42 = vpop.xlane.xlu0 %206  ;;  %v231_v59 = vmul.f32 0.00390625, %v213_v41 }
  0xc3   : > { %v229_v56 = vmul.f32 0.00390625, %v207_v42 }
  0xc5   : > { %v216_v43 = vpop.xlane.xlu1 %215 }
  0xc6   : > { %v210_v44 = vpop.xlane.xlu0 %209  ;;  %v232_v3 = vmul.f32 0.00390625, %v216_v43 }
  0xc7   : > { %v230_v57 = vmul.f32 0.00390625, %v210_v44  ;;  %v322_v44 = vsub.s32 %v319_v31, %v1138_v51 }
  0xc9   : > { %v242_v46 = vpop.xlane.xlu1 %241 }
  0xca   : > { %v239_v47 = vpop.xlane.xlu0 %238  ;;  %v262_v7 = vadd.f32 %v242_v46, %v230_v57 }
  0xcb   : > { %v261_v10 = vadd.f32 %v239_v47, %v229_v56 }
  0xcc   : > { %v288_v32 = vrot.slane %v262_v7, %v287_v60 }
  0xcd   : > { %v245_v49 = vpop.xlane.xlu1 %244  ;;  %v283_v33 = vrot.slane %v261_v10, %v282_v61 }
  0xce   : > { %v219_v50 = vpop.xlane.xlu0 %218  ;;  %v263_v16 = vadd.f32 %v245_v49, %v231_v59  ;;  %v410_v59 = vld [vmem:[%s1243_s2] sm:$0xff] }
  0xcf   : > { %v233_v17 = vmul.f32 0.00390625, %v219_v50  ;;  %v290_v45 = vsel %vm289_vm3, %v288_v32, %v283_v33  ;;  %735 = vmatpush3.xpose.msk.msra.mxu1 %vm418_vm2, %v410_v59 }
  0xd0   : > { %v295_v37 = vrot.slane %v263_v16, %v294_v13 }
  0xd1   : > { %v248_v53 = vpop.xlane.xlu1 %247 }
  0xd2   : > { %v222_v54 = vpop.xlane.xlu0 %221  ;;  %v264_v21 = vadd.f32 %v248_v53, %v232_v3  ;;  %v297_v49 = vsel %vm296_vm4, %v295_v37, %v290_v45 }
  0xd3   : > { %v234_v24 = vmul.f32 0.00390625, %v222_v54 }
  0xd4   : > { %v302_v38 = vrot.slane %v264_v21, %v301_v20 }
  0xd5   : > { %v251_v63 = vpop.xlane.xlu1 %250 }
  0xd6   : > { %v225_v11 = vpop.xlane.xlu0 %224  ;;  %v265_v29 = vadd.f32 %v251_v63, %v233_v17  ;;  %v304_v52 = vsel %vm303_vm5, %v302_v38, %v297_v49 }
  0xd7   : > { %v235_v42 = vmul.f32 0.00390625, %v225_v11 }
  0xd8   : > { %v309_v41 = vrot.slane %v265_v29, %v308_v28 }
  0xd9   : > { %v254_v30 = vpop.xlane.xlu1 %253 }
  0xda   : > { %v266_v35 = vadd.f32 %v254_v30, %v234_v24  ;;  %v228_v36 = vpop.xlane.xlu0 %227  ;;  %v311_v54 = vsel %vm310_vm6, %v309_v41, %v304_v52 }
  0xdb   : > { %v236_v39 = vmul.f32 0.00390625, %v228_v36 }
  0xdc   : > { %v316_v46 = vrot.slane %v266_v35, %v315_v34 }
  0xdd   : > { %v260_v43 = vpop.xlane.xlu1 %259 }
  0xde   : > { %v268_v47 = vadd.f32 %v260_v43, %v236_v39  ;;  %v257_v48 = vpop.xlane.xlu0 %256  ;;  %v318_v56 = vsel %vm317_vm7, %v316_v46, %v311_v54 }
  0xdf   : > { %v267_v50 = vadd.f32 %v257_v48, %v235_v42 }
  0xe0   : > { %v330_v53 = vrot.slane %v268_v47, %v329_v40 }
  0xe1   : > { %v323_v55 = vrot.slane %v267_v50, %v322_v44 }
  0xe3   : > { %v325_v57 = vsel %vm324_vm8, %v323_v55, %v318_v56 }
  0xe4   : > { %v332_v58 = vsel %vm331_vm9, %v330_v53, %v325_v57 }
  0xe5   : > { %718 = vmatmul.mubr.msk.f32.vlgmr.msra.gmra.mxu0 %vm333_vm0, %v332_v58 }
 0x1a5   : > { %v405_v60 = vpop.f32.mrf.mxu0 }
 0x1a6   : > { %v409_v61 = vmax.f32 %v405_v60, 0.0 }
 0x1a7   : > { %v719_v62 = vpop.f32.mrf.mxu0 }
 0x1a8   : > { %737 = vmatmul.mubr.msk.f32.vlgmr.msra.gmra.mxu1 %vm418_vm2, %v409_v61 }
 0x268   : > { %v512_v63 = vpop.f32.mrf.mxu1 }
 0x269   : > { %v696_v3 = vmul.f32 -1.442695, %v512_v63 }
 0x26a   : > { %v738_v7 = vpop.f32.mrf.mxu1 }
 0x26b   : > { %791 = vpow2.f32 %v696_v3 }
 0x278   : > { %v792_v10 = vpop.eup %791 }
 0x279   : > { %v519_v11 = vadd.f32 1.0, %v792_v10 }
 0x27b   : > { %793 = vrcp.f32 %v519_v11 }
 0x288   : > { %v794_v13 = vpop.eup %793 }
 0x289   : > { %v525_v16 = vrot.slane %v794_v13, %v524_v12 }
 0x28b   : > { %531 = vbcast.lane.b32.xlu1 %v525_v16, 264  ;;  %527 = vbcast.lane.b32.xlu0 %v525_v16, 256 }
 0x28f   : > { %535 = vbcast.lane.b32.xlu1 %v525_v16, 272  ;;  %543 = vbcast.lane.b32.xlu0 %v525_v16, 288 }
 0x293   : > { %539 = vbcast.lane.b32.xlu1 %v525_v16, 280  ;;  %551 = vbcast.lane.b32.xlu0 %v525_v16, 304 }
 0x297   : > { %547 = vbcast.lane.b32.xlu1 %v525_v16, 296 }
 0x29b   : > { %555 = vbcast.lane.b32.xlu1 %v525_v16, 312 }
 0x2fd   : > { %v532_v17 = vpop.permute.xlu1 %531  ;;  %v528_v20 = vpop.permute.xlu0 %527 }
 0x2fe   : > { %v559_v21 = vmul.f32 %v532_v17, %v1049_v8  ;;  %v560_v24 = vmul.f32 %v532_v17, %v1052_v9  ;;  %v557_v25 = vmul.f32 %v528_v20, %v1033_v2  ;;  %v558_v51 = vmul.f32 %v528_v20, %v1038_v4 }
 0x300   : > { %575 = vst [vmem:[%s1161_s6 + $0x10] sm:$0xff] %v559_v21  ;;  %576 = vst [vmem:[%s1161_s6 + $0x18] sm:$0xff] %v560_v24 }
 0x301   : > { %573 = vst [vmem:[%s1161_s6] sm:$0xff] %v557_v25  ;;  %574 = vst [vmem:[%s1161_s6 + $0x8] sm:$0xff] %v558_v51  ;;  %v536_v8 = vpop.permute.xlu1 %535  ;;  %v544_v2 = vpop.permute.xlu0 %543 }
 0x302   : > { %v561_v4 = vmul.f32 %v536_v8, %v1027_v0  ;;  %v562_v9 = vmul.f32 %v536_v8, %v1030_v1  ;;  %v565_v28 = vmul.f32 %v544_v2, %v1063_v14  ;;  %v566_v29 = vmul.f32 %v544_v2, %v1066_v15 }
 0x304   : > { %577 = vst [vmem:[%s1161_s6 + $0x20] sm:$0xff] %v561_v4  ;;  %578 = vst [vmem:[%s1161_s6 + $0x28] sm:$0xff] %v562_v9 }
 0x305   : > { %581 = vst [vmem:[%s1161_s6 + $0x40] sm:$0xff] %v565_v28  ;;  %582 = vst [vmem:[%s1161_s6 + $0x48] sm:$0xff] %v566_v29  ;;  %v540_v30 = vpop.permute.xlu1 %539  ;;  %v552_v31 = vpop.permute.xlu0 %551 }
 0x306   : > { %v563_v0 = vmul.f32 %v540_v30, %v1041_v5  ;;  %v564_v32 = vmul.f32 %v540_v30, %v1044_v6  ;;  %v569_v1 = vmul.f32 %v552_v31, %v1083_v22  ;;  %v570_v14 = vmul.f32 %v552_v31, %v1086_v23 }
 0x308   : > { %579 = vst [vmem:[%s1161_s6 + $0x30] sm:$0xff] %v563_v0  ;;  %580 = vst [vmem:[%s1161_s6 + $0x38] sm:$0xff] %v564_v32 }
 0x309   : > { %585 = vst [vmem:[%s1161_s6 + $0x60] sm:$0xff] %v569_v1  ;;  %586 = vst [vmem:[%s1161_s6 + $0x68] sm:$0xff] %v570_v14  ;;  %v548_v15 = vpop.permute.xlu1 %547 }
 0x30a   : > { %v567_v33 = vmul.f32 %v548_v15, %v1073_v18  ;;  %v568_v34 = vmul.f32 %v548_v15, %v1076_v19 }
 0x30c   : > { %583 = vst [vmem:[%s1161_s6 + $0x50] sm:$0xff] %v567_v33  ;;  %584 = vst [vmem:[%s1161_s6 + $0x58] sm:$0xff] %v568_v34 }
 0x30d   : > { %v556_v5 = vpop.permute.xlu1 %555 }
 0x30e   : > { %v571_v6 = vmul.f32 %v556_v5, %v1093_v26  ;;  %v572_v18 = vmul.f32 %v556_v5, %v1096_v27 }
 0x310   : > { %587 = vst [vmem:[%s1161_s6 + $0x70] sm:$0xff] %v571_v6  ;;  %588 = vst [vmem:[%s1161_s6 + $0x78] sm:$0xff] %v572_v18 }
 0x311   : > { %836 = shalt.err (!%p833_p10)
}
 0x312   : > { %s837_s28 = scalar_lea.hbm %s1192_s19, 2048  ;;  %s841_s10 = scalar_lea.hbm %s1244_s3, 4096 }
 0x313   : > { %p838_p0 = scmp.ne.s32.totalorder %s1192_s19, %s837_s28  ;;  %p842_p1 = scmp.lt.s32.totalorder %s1192_s19, %s1244_s3 }
 0x314   : > { %p843_p3 = scmp.lt.s32.totalorder %s841_s10, %s837_s28 }
 0x315   : > { %p839_p2 = pnand %p838_p0, %p1253_p12 }
 0x316   : > { %p844_p6 = por %p843_p3, %p842_p1 }
 0x317   : > { %p840_p9 = pneg %p839_p2 }
 0x319   : > { %p845_p11 = pnand %p844_p6, %p840_p9 }
 0x31b   : > { %848 = shalt.err (!%p845_p11)
}
 0x31c   : > { %s895_s4 = smov 256   ;;  %s896_s6 = smov 16  }
 0x31d   : > { %741 = dma.vmem_to_hbm [thread:$0]  (%p1253_p12), %s1194_s7, 2048, %s1192_s19, %s590_s16, %s895_s4, %s895_s4, %s896_s6  }
 0x31e PF: > { %s618_s9 = sand.u32 1, %s875_s12   ;;  %p1254_p13 = scmp.ne.s32.totalorder %s1250_s25, 0 }
 0x31f   : > { %p1255_p4 = scmp.ge.s32.totalorder %s887_s15, 2  ;;  %s619_s8 = scalar_lea.sflag [#allocation4], %s618_s9 }
 0x321   : > { %p748_p5 = pnand %p1255_p4, %p1254_p13 }
 0x323   : > { %p749_p7 = pneg %p748_p5 }
 0x325   : > { %870 = dma.done.wait (%p749_p7), %s619_s8, 2048  }
 0x326   : > { %872 = vsyncadd (%p749_p7), %s619_s8, 4294965248  ;;  %p16_p8 = scmp.ge.s32.totalorder %s942_s18, 4   ;;  %s1256_s12 = smov %s879_s13 }
 0x327   : > { %s1257_s13 = smov %s883_s14  ;;  %s1258_s14 = smov %s954_s21 }
 0x328   : > { %s1259_s15 = smov %s942_s18  ;;  %18 = sbr.rel (!%p16_p8) target bundleno = 5 (0x5), region = 77 }
 0x32d   :  { %624 = vsyncpa [#allocation3], 1 }
 0x32e   :  { %626 = vsyncpa [#allocation3 + $0x1], 1 }
 0x32f   :  { %627 = vsyncpa [#allocation4], 1 }
 0x330   :  { %629 = vsyncpa [#allocation4 + $0x1], 1 }

</bundles_post_ra>
